<compile_context>
chip_gen: v7x
topology: tpu7x:2x2x1
jax: 0.10.0
libtpu: 0.0.40
codegen_flags: <defaults>
</compile_context>

<pallas_src>
import functools
import math

import jax
import jax.numpy as jnp
from jax import lax
from jax.experimental import pallas as pl
from jax.experimental.pallas import tpu as pltpu


def _round_up(x: int, m: int) -> int:
    return ((x + m - 1) // m) * m


# ----------------------------------------------------------------------------- kernels


def _gather_vmem_kernel(ids_ref, tab_ref, o_ref, *, tile: int, scale: float):
    """VMEM-resident table path.

    ids_ref : SMEM (n_pad,) int32   (scalar-prefetched token ids)
    tab_ref : VMEM (V, E)           (constant index_map -> DMA'd from HBM once)
    o_ref   : VMEM (tile, E)        (output block for this grid step)
    """
    base = pl.program_id(0) * tile

    def body(i, carry):
        row = ids_ref[base + i]                               # scalar SMEM read
        vec = tab_ref[pl.ds(row, 1), :]                       # (1, E) row gather
        o_ref[pl.ds(i, 1), :] = (vec * scale).astype(o_ref.dtype)
        return carry

    lax.fori_loop(0, tile, body, 0, unroll=False)


def _gather_hbm_kernel(ids_ref, tab_hbm, o_ref, sem, *, tile: int, scale: float,
                       nslot: int):
    """Large-table path: per-token row DMA gather with `nslot` outstanding copies.

    ids_ref : SMEM (n_pad,) int32
    tab_hbm : HBM  (V, E)   (memory_space=pl.ANY, never staged wholesale)
    o_ref   : VMEM (tile, E)
    sem     : DMA semaphores (nslot,)
    """
    base = pl.program_id(0) * tile

    def start(i):
        row = ids_ref[base + i]
        pltpu.make_async_copy(
            tab_hbm.at[pl.ds(row, 1), :],         # (1, E) source row in HBM
            o_ref.at[pl.ds(i, 1), :],             # (1, E) destination row in VMEM
            sem.at[i % nslot],
        ).start()

    def wait(i):
        pltpu.make_async_copy(
            tab_hbm.at[pl.ds(0, 1), :],           # size-only descriptor for the wait
            o_ref.at[pl.ds(i, 1), :],
            sem.at[i % nslot],
        ).wait()

    # Prime `nslot` outstanding row copies (tile >= nslot by construction).
    def prime(i, carry):
        start(i)
        return carry

    lax.fori_loop(0, nslot, prime, 0, unroll=True)

    # Rolling wait-one / start-next.
    def body(i, carry):
        wait(i)

        @pl.when(i + nslot < tile)
        def _():
            start(i + nslot)

        return carry

    lax.fori_loop(0, tile, body, 0, unroll=False)

    # One vectorized sqrt(E) scale pass over the gathered block.
    o_ref[...] = (o_ref[...] * scale).astype(o_ref.dtype)


# ----------------------------------------------------------------------------- wrapper


def token_embedding_forward(tokens: jnp.ndarray, table: jnp.ndarray, *,
                            force_hbm_gather: bool = False) -> jnp.ndarray:
    """tokens: (B, S) integer ids; table: (V, E).  Returns (B, S, E) = table[tokens]*sqrt(E)."""
    B, S = tokens.shape
    V, E = table.shape
    N = B * S
    itemsize = jnp.dtype(table.dtype).itemsize
    table_bytes = V * E * itemsize

    # Generation-aware VMEM capacity (v5e/v6e: 128 MiB, v7x: 64 MiB per TensorCore).
    try:
        vmem_cap = int(pltpu.get_tpu_info().vmem_capacity_bytes)
    except Exception:   # interpret mode / unknown chip
        vmem_cap = 64 * 1024 * 1024

    # ---- token-tile sizing: large, pipeline-amortizing, multiple of 256 rows ----
    out_budget = 8 * 1024 * 1024
    tile = max(256, (out_budget // max(1, E * itemsize)) // 256 * 256)
    tile = min(tile, 4096)
    tile = min(tile, _round_up(N, 8))        # small inputs: single full-extent block
    n_tiles = pl.cdiv(N, tile)
    n_pad = n_tiles * tile

    # ---- table residency decision (conservatively budget 2x for double buffering) ----
    out_blocks_bytes = 2 * tile * E * itemsize
    use_vmem_table = (not force_hbm_gather) and (
        2 * table_bytes + out_blocks_bytes + (4 << 20) <= int(0.7 * vmem_cap))

    # ---- token ids -> SMEM scalar-prefetch operand ----
    # Note: ids are clipped to [0, V-1]; PyTorch nn.Embedding would raise on OOB ids.
    # TODO(synk): chunk the id vector per call for extremely long sequences (SMEM 1-D
    # arrays pad to the next power of two in bytes).
    ids = jnp.clip(tokens.reshape(N).astype(jnp.int32), 0, V - 1)
    if n_pad != N:
        ids = jnp.pad(ids, (0, n_pad - N))   # padded slots gather row 0, sliced off below

    scale = float(math.sqrt(E))
    out_shape = jax.ShapeDtypeStruct((n_pad, E), table.dtype)
    out_spec = pl.BlockSpec((tile, E), lambda t, ids_sref: (t, 0))

    if use_vmem_table:
        kernel = functools.partial(_gather_vmem_kernel, tile=tile, scale=scale)
        tab_spec = pl.BlockSpec((V, E), lambda t, ids_sref: (0, 0))   # resident, DMA'd once
        scratch = []
        vmem_need = 2 * table_bytes + out_blocks_bytes + (8 << 20)
        table_read = table_bytes
    else:
        nslot = 8
        kernel = functools.partial(_gather_hbm_kernel, tile=tile, scale=scale,
                                   nslot=nslot)
        tab_spec = pl.BlockSpec(memory_space=pl.ANY)                  # table stays in HBM
        scratch = [pltpu.SemaphoreType.DMA((nslot,))]
        vmem_need = out_blocks_bytes + (8 << 20)
        table_read = n_pad * E * itemsize                             # only gathered rows

    vmem_limit = int(min(int(0.9 * vmem_cap), max(32 << 20, vmem_need)))

    cost = pl.CostEstimate(
        flops=n_pad * E,                     # just the sqrt(E) scale multiply
        transcendentals=0,
        bytes_accessed=n_pad * 4 + table_read + n_pad * E * itemsize,
    )

    out = pl.pallas_call(
        kernel,
        out_shape=out_shape,
        grid_spec=pltpu.PrefetchScalarGridSpec(
            num_scalar_prefetch=1,
            grid=(n_tiles,),
            in_specs=[tab_spec],
            out_specs=out_spec,
            scratch_shapes=scratch,
        ),
        compiler_params=pltpu.CompilerParams(
            dimension_semantics=("parallel",),
            vmem_limit_bytes=vmem_limit,
        ),
        cost_estimate=cost,
    )(ids, table)

    return out[:N].reshape(B, S, E)


if __name__ == "__main__":
    vocab_size, emb_size = 96, 32
    B, S = 2, 8

    key = jax.random.PRNGKey(0)
    k_tab, k_tok, k_tok2 = jax.random.split(key, 3)
    table = jax.random.normal(k_tab, (vocab_size, emb_size), dtype=jnp.float32)
    tokens = jax.random.randint(k_tok, (B, S), 0, vocab_size, dtype=jnp.int32)

    ref = table[tokens] * math.sqrt(emb_size)

    # Small-table path: VMEM-resident table + in-kernel row gather.
    out = jax.block_until_ready(token_embedding_forward(tokens, table))
    assert out.shape == (B, S, emb_size)
    assert jnp.allclose(out, ref, rtol=1e-5, atol=1e-5), "VMEM-gather mismatch"

    # Large-table path (forced on the same small inputs): HBM table + per-row DMA gather.
    out_hbm = jax.block_until_ready(
        token_embedding_forward(tokens, table, force_hbm_gather=True))
    assert jnp.allclose(out_hbm, ref, rtol=1e-5, atol=1e-5), "HBM-gather mismatch"

    # Ragged token count exercises the padding / slice-off path.
    tokens2 = jax.random.randint(k_tok2, (B, 5), 0, vocab_size, dtype=jnp.int32)
    out2 = jax.block_until_ready(token_embedding_forward(tokens2, table))
    ref2 = table[tokens2] * math.sqrt(emb_size)
    assert jnp.allclose(out2, ref2, rtol=1e-5, atol=1e-5), "padded-path mismatch"

    print("KERNEL_OK")
</pallas_src>

<mosaic_0001>
module attributes {stable_mosaic.version = 11 : i64} {
  func.func @_gather_vmem_kernel(%arg0: i32, %arg1: memref<16xi32, #tpu.memory_space<smem>>, %arg2: memref<96x32xf32, #tpu.memory_space<vmem>>, %arg3: memref<16x32xf32, #tpu.memory_space<vmem>>) attributes {dimension_semantics = [#tpu.dimension_semantics<parallel>], iteration_bounds = array<i64: 1>, scalar_prefetch = 1 : i64, scratch_operands = 0 : i64, tpu.core_type = #tpu.core_type<tc>, window_params = [{pipeline_mode = #tpu.pipeline_mode<synchronous>, transform_indices = @transform_0, window_bounds = array<i64: 96, 32>}, {transform_indices = @transform_1, window_bounds = array<i64: 16, 32>}]} {
    %c16_i32 = arith.constant 16 : i32
    %0 = arith.muli %arg0, %c16_i32 : i32
    %c0_i32 = arith.constant 0 : i32
    %c16_i32_0 = arith.constant 16 : i32
    %1 = arith.addi %c0_i32, %c16_i32_0 : i32
    %c1_i32 = arith.constant 1 : i32
    scf.for %arg4 = %c0_i32 to %1 step %c1_i32  : i32 {
      %2 = arith.addi %0, %arg4 : i32
      %3 = arith.index_cast %2 : i32 to index
      %4 = memref.load %arg1[%3] : memref<16xi32, #tpu.memory_space<smem>>
      %5 = arith.index_cast %4 : i32 to index
      %c0 = arith.constant 0 : index
      %6 = vector.load %arg2[%5, %c0] : memref<96x32xf32, #tpu.memory_space<vmem>>, vector<1x32xf32>
      %cst = arith.constant 5.65685415 : f32
      %7 = vector.broadcast %cst : f32 to vector<1x32xf32>
      %8 = arith.mulf %6, %7 : vector<1x32xf32>
      %9 = arith.index_cast %arg4 : i32 to index
      %c0_2 = arith.constant 0 : index
      %10 = vector.load %arg3[%9, %c0_2] : memref<16x32xf32, #tpu.memory_space<vmem>>, vector<1x32xf32>
      tpu.vector_store %arg3[%9, %c0_2], %8 {strides = array<i32>} : memref<16x32xf32, #tpu.memory_space<vmem>>, vector<1x32xf32>,
    }
    %c16_i32_1 = arith.constant 16 : i32
    return
  }
  func.func @transform_0(%arg0: i32, %arg1: memref<16xi32, #tpu.memory_space<smem>>) -> (i32, i32) {
    %c0_i32 = arith.constant 0 : i32
    %c0_i32_0 = arith.constant 0 : i32
    %c0_i32_1 = arith.constant 0 : i32
    return %c0_i32, %c0_i32_0 : i32, i32
  }
  func.func @transform_1(%arg0: i32, %arg1: memref<16xi32, #tpu.memory_space<smem>>) -> (i32, i32) {
    %c0_i32 = arith.constant 0 : i32
    %c0_i32_0 = arith.constant 0 : i32
    return %arg0, %c0_i32 : i32, i32
  }
}

</mosaic_0001>

<bundles_post_ra>
// kernel: tpu_custom_call.1
= control target key start
LH: loop header
LB: loop body
LE: loop exit
PB: predicated region body
PF: predicated region fallthrough
CT: control target
= control target key end

     0   :  { %s149_s0 = inlined_call_operand.vmem [shape: s32[16], index: 0, kind: input, shape index: {}]   ;;  %s150_s1 = inlined_call_operand.vmem [shape: f32[96,32], index: 1, kind: input, shape index: {}]   ;;  %s151_s2 = inlined_call_operand.hbm [shape: f32[16,32], index: 2, kind: output, shape index: {}]  }
   0x1   :  { %s7_s11 = sshll.u32 %s149_s0, 4  ;;  %s8_s11 = int_to_ptr.vmem [resolvable:$true] %s7_s11 }
   0x2   :  { %s66_s12 = scalar_lea.vmem %s8_s11, 16  ;;  %p71_p1 = scmp.lt.s32.totalorder %s8_s11, %s8_s11 }
   0x3   :  { %p67_p0 = scmp.ne.s32.totalorder %s8_s11, %s66_s12  ;;  %p72_p2 = scmp.lt.s32.totalorder %s66_s12, %s66_s12 }
   0x5   :  { %p73_p3 = por %p72_p2, %p71_p1 }
   0x7   :  { %p74_p4 = pnand %p73_p3, %p67_p0 }
   0x9   :  { %77 = shalt.err (!%p74_p4)  }
   0xa   :  { %s112_s13 = smov [#allocation3]  }
   0xb   :  { %10 = dma.vmem_to_smem %s8_s11, 16, %s112_s13, [#allocation2] }
   0xc   :  { %104 = dma.done.wait [#allocation2], 16 }
   0xd   :  { %105 = vsyncadd [#allocation2], 4294967280 }
   0xe   :  { %12 = sfence }
   0xf   :  { %13 = vsyncpa [#allocation5], 0  ;;  %s108_s14 = smov 0  }
  0x10 LB: > { %s24_s15 = sld [smem:[#allocation3 + %s110_s14]]  ;;  %vm29_vm0 = vcmask 253952   ;;  %s28_s18 = scalar_lea.vmem [#allocation4], %s110_s14  ;;  %s110_s14 = sphi %s108_s14, %s22_s14  }
  0x11   : > { %s22_s14 = sadd.s32 1, %s110_s14  }
  0x12   : > { %p19_p5 = scmp.ge.s32.totalorder %s22_s14, 16  }
  0x13   :  { %s113_s19 = smov (%p19_p5), [#allocation4]  }
  0x14   :  { %21 = sbr.rel (!%p19_p5) target bundleno = 16 (0x10), region = 33  ;;  %s36_s20 = sshll.u32 (%p19_p5), %s113_s19, 4  ;;  %s37_s20 = int_to_ptr.vmem [resolvable:$true] %s36_s20 }
  0x15   :  { %s78_s21 = scalar_lea.vmem (%p19_p5), %s37_s20, 256  ;;  %p83_p7 = scmp.lt.s32.totalorder (%p19_p5), %s37_s20, %s37_s20 }
  0x16   : > { %s25_s17 = scalar_lea.vmem %s150_s1, %s24_s15  ;;  %p79_p6 = scmp.ne.s32.totalorder (%p19_p5), %s37_s20, %s78_s21 }
  0x17   : > { %v26_v0 = vld [vmem:[%s25_s17] sm:$0x1]  ;;  %p84_p8 = scmp.lt.s32.totalorder (%p19_p5), %s78_s21, %s78_s21 }
  0x18   : > { %v27_v1 = vmul.f32 5.656854, %v26_v0 }
  0x19   :  { %p85_p9 = por (%p19_p5), %p84_p8, %p83_p7 }
  0x1a   : > { %30 = vst.msk [vmem:[%s28_s18] sm:$0x1] %vm29_vm0, %v27_v1 }
  0x1b   :  { %p86_p10 = pnand %p85_p9, %p79_p6 }
  0x1d   :  { %89 = shalt.err (!%p86_p10)
}
  0x1e   :  { %s90_s24 = scalar_lea.hbm %s151_s2, 256 }
  0x1f   :  { %p91_p11 = scmp.ne.s32.totalorder %s151_s2, %s90_s24  ;;  %p94_p12 = scmp.lt.u32.totalorder %s90_s24, %s151_s2 }
  0x21   :  { %p96_p13 = pnand %p94_p12, %p91_p11 }
  0x23   :  { %99 = shalt.err (!%p96_p13)
}
  0x24   :  { %s114_s1 = smov 128   ;;  %s115_s29 = smov 8  }
  0x25   :  { %42 = dma.vmem_to_hbm [thread:$0]  %s37_s20, 256, %s151_s2, [#allocation5], %s114_s1, %s114_s1, %s115_s29  }
  0x26   :  { %106 = dma.done.wait [#allocation5], 256  }
  0x27   :  { %107 = vsyncadd [#allocation5], 4294967040 }
  0x28   :  { %46 = vsyncpa [#allocation5], 1 }

</bundles_post_ra>
